<compile_context>
chip_gen: v7x
topology: tpu7x:2x2x1
jax: 0.10.0
libtpu: 0.0.40
codegen_flags: <defaults>
</compile_context>

<pallas_src>
import functools

import jax
import jax.numpy as jnp
from jax import lax
from jax.experimental import pallas as pl
from jax.experimental.pallas import tpu as pltpu

D_OUT_PAD = 128              # lane-dense padded output width (last dim of every matmul)
K_PAD = 16                   # padded contraction width for hidden layers (max real fan-in)
EPS = 1e-5                   # BatchNorm1d default eps
MAX_SINGLE_BLOCK_BATCH = 16384   # ~2 KiB VMEM per row -> ~32 MiB at this ceiling


def _round_up(n, m):
    return ((n + m - 1) // m) * m


def _mlp_kernel(x_ref, w0_ref, w_ref, b_last_ref, g_ref, beta_ref, o_ref, *, n_layers):
    """Fused (linear -> folded training-mode BN)* -> linear+bias -> sigmoid.

    x_ref:      (B, k_in)             input (k_in = fan-in padded to multiple of 8)
    w0_ref:     (k_in, 128)           first-layer weight, zero-padded
    w_ref:      (L-1, 16, 128)        remaining weights, zero-padded (in x out)
    b_last_ref: (1, 128)              bias of the LAST layer only (others cancel under BN)
    g_ref:      (L-1, 1, 16)          BN gammas (padding lanes are 0)
    beta_ref:   (L-1, 1, 16)          BN betas  (padding lanes are 0)
    o_ref:      (B, 128)              output (valid in the first `out_ch` lanes)
    """
    # Layer 0.
    y = jnp.dot(x_ref[...], w0_ref[...], preferred_element_type=jnp.float32)  # (B, 128)

    for i in range(n_layers - 1):                     # static unroll, 6 BN blocks
        # Training-mode BatchNorm1d folded into one scale/shift, on the 16 valid lanes.
        # Linear bias omitted: (y - mean(y)) is bias-independent.
        # NOTE: single-pass var = E[x^2] - E[x]^2 — fine at this scale in f32;
        # revisit if activation magnitudes ever grow large (cancellation risk).
        z = y[:, :K_PAD]                               # (B, 16)
        mean = jnp.mean(z, axis=0, keepdims=True)      # (1, 16)
        mean_sq = jnp.mean(z * z, axis=0, keepdims=True)
        var = mean_sq - mean * mean
        scale = g_ref[i] * lax.rsqrt(var + EPS)        # (1, 16)  EUP rsqrt
        shift = beta_ref[i] - mean * scale             # (1, 16)
        z = z * scale + shift                          # dead lanes -> exactly 0 (gamma=0 pad)
        # Next layer (i + 1): contraction width is only 16.
        y = jnp.dot(z, w_ref[i], preferred_element_type=jnp.float32)  # (B, 128)

    y = y + b_last_ref[...]                            # only the last bias survives BN
    # Full 128-lane sigmoid + unmasked lane-dense store; slice to 5 lanes outside.
    o_ref[...] = jax.nn.sigmoid(y)


def prepare_params(weights, biases, gammas, betas):
    """One-time padding/stacking of parameters into lane-aligned slabs (not per call)."""
    L = len(weights)
    c_in = weights[0].shape[0]
    k_in = _round_up(c_in, 8)
    assert all(w.shape[0] <= K_PAD for w in weights[1:]), "hidden fan-in exceeds K_PAD"
    assert all(w.shape[1] <= D_OUT_PAD for w in weights), "fan-out exceeds 128"

    w0 = jnp.zeros((k_in, D_OUT_PAD), jnp.float32)
    w0 = w0.at[:c_in, :weights[0].shape[1]].set(weights[0].astype(jnp.float32))

    w_rest = jnp.zeros((L - 1, K_PAD, D_OUT_PAD), jnp.float32)
    for i, w in enumerate(weights[1:]):
        fi, fo = w.shape
        w_rest = w_rest.at[i, :fi, :fo].set(w.astype(jnp.float32))

    fo_last = biases[-1].shape[0]
    b_last = jnp.zeros((1, D_OUT_PAD), jnp.float32).at[0, :fo_last].set(biases[-1])

    # Padding lanes get gamma=0, beta=0 -> dead lanes are exactly zero after BN.
    g_p = jnp.zeros((L - 1, 1, K_PAD), jnp.float32)
    bt_p = jnp.zeros((L - 1, 1, K_PAD), jnp.float32)
    for i, (g, bt) in enumerate(zip(gammas, betas)):
        fo = g.shape[0]
        g_p = g_p.at[i, 0, :fo].set(g)
        bt_p = bt_p.at[i, 0, :fo].set(bt)
    return w0, w_rest, b_last, g_p, bt_p


@functools.partial(jax.jit, static_argnames=("out_channels",))
def mlp_forward(x, w0, w_rest, b_last, g_p, bt_p, out_channels):
    """x: (B, C_in) f32. Returns (B, out_channels) f32."""
    B, c_in = x.shape
    k_in = w0.shape[0]
    L = w_rest.shape[0] + 1
    # Single-block design: exact batch statistics require the whole batch resident
    # in VMEM.  Rows must be sublane-aligned; ceiling is generous (~2 KiB/row).
    assert B % 8 == 0, "batch must be a multiple of 8 (sublane-aligned, exact BN stats)"
    assert B <= MAX_SINGLE_BLOCK_BATCH, "batch too large for single-block BN kernel"
    assert c_in <= k_in

    # Only pad x to the first layer's (8-aligned) fan-in — not to 128 lanes.
    x_p = jnp.pad(x.astype(jnp.float32), ((0, 0), (0, k_in - c_in)))

    flops = 2 * B * (k_in * D_OUT_PAD + (L - 1) * K_PAD * D_OUT_PAD)
    bytes_accessed = 4 * (B * k_in + w0.size + w_rest.size + b_last.size
                          + g_p.size + bt_p.size + B * D_OUT_PAD)
    transcendentals = B * D_OUT_PAD + (L - 1) * K_PAD   # sigmoid + rsqrt

    kernel = functools.partial(_mlp_kernel, n_layers=L)
    out = pl.pallas_call(
        kernel,
        out_shape=jax.ShapeDtypeStruct((B, D_OUT_PAD), jnp.float32),
        in_specs=[
            pl.BlockSpec(memory_space=pltpu.MemorySpace.VMEM),   # x
            pl.BlockSpec(memory_space=pltpu.MemorySpace.VMEM),   # w0 (k_in,128)
            pl.BlockSpec(memory_space=pltpu.MemorySpace.VMEM),   # w_rest (L-1,16,128)
            pl.BlockSpec(memory_space=pltpu.MemorySpace.VMEM),   # last-layer bias
            pl.BlockSpec(memory_space=pltpu.MemorySpace.VMEM),   # gammas
            pl.BlockSpec(memory_space=pltpu.MemorySpace.VMEM),   # betas
        ],
        out_specs=pl.BlockSpec(memory_space=pltpu.MemorySpace.VMEM),
        compiler_params=pltpu.CompilerParams(
            vmem_limit_bytes=48 * 1024 * 1024,   # safe on v7x (64 MiB), ample on v5e/v6e
        ),
        cost_estimate=pl.CostEstimate(
            flops=flops,
            transcendentals=transcendentals,
            bytes_accessed=bytes_accessed,
        ),
    )(x_p, w0, w_rest, b_last, g_p, bt_p)
    return out[:, :out_channels]


def mlp_reference(x, weights, biases, gammas, betas):
    """Pure-JAX reference (full PyTorch semantics: biases everywhere, two-pass var)."""
    h = x.astype(jnp.float32)
    L = len(weights)
    for i in range(L):
        h = h @ weights[i] + biases[i]
        if i < L - 1:
            mean = jnp.mean(h, axis=0, keepdims=True)
            var = jnp.mean((h - mean) ** 2, axis=0, keepdims=True)
            h = (h - mean) * lax.rsqrt(var + EPS)
            h = h * gammas[i] + betas[i]
    return jax.nn.sigmoid(h)


def init_params(key, input_channels, output_channels=5,
                hidden_layers=(8, 8, 16, 16, 8, 8)):
    """Deterministic parameter init (PyTorch Linear-style uniform)."""
    dims = [input_channels, *hidden_layers, output_channels]
    weights, biases, gammas, betas = [], [], [], []
    for i in range(len(dims) - 1):
        fi, fo = dims[i], dims[i + 1]
        key, kw, kb = jax.random.split(key, 3)
        bound = 1.0 / jnp.sqrt(float(fi))
        # stored as (in, out) so the kernel computes x @ W
        weights.append(jax.random.uniform(kw, (fi, fo), jnp.float32, -bound, bound))
        biases.append(jax.random.uniform(kb, (fo,), jnp.float32, -bound, bound))
        if i != len(dims) - 2:
            gammas.append(jnp.ones((fo,), jnp.float32))   # BN weight init
            betas.append(jnp.zeros((fo,), jnp.float32))   # BN bias init
    return weights, biases, gammas, betas


if __name__ == "__main__":
    input_channels = 4
    output_channels = 5
    batch = 8

    key = jax.random.PRNGKey(0)
    key, kx = jax.random.split(key)
    x = jax.random.normal(kx, (batch, input_channels), jnp.float32)

    weights, biases, gammas, betas = init_params(key, input_channels, output_channels)

    # One-time parameter padding/stacking (outside the per-call hot path).
    w0, w_rest, b_last, g_p, bt_p = prepare_params(weights, biases, gammas, betas)

    out = mlp_forward(x, w0, w_rest, b_last, g_p, bt_p, output_channels)
    out = jax.block_until_ready(out)

    ref = mlp_reference(x, weights, biases, gammas, betas)
    assert out.shape == (batch, output_channels)
    assert jnp.max(jnp.abs(out - ref)) < 1e-4, "mismatch vs JAX reference"

    print("KERNEL_OK")
</pallas_src>

<mosaic_0001>
module attributes {stable_mosaic.version = 11 : i64} {
  func.func @_mlp_kernel(%arg0: memref<8x8xf32, #tpu.memory_space<vmem>>, %arg1: memref<8x128xf32, #tpu.memory_space<vmem>>, %arg2: memref<6x16x128xf32, #tpu.memory_space<vmem>>, %arg3: memref<1x128xf32, #tpu.memory_space<vmem>>, %arg4: memref<6x1x16xf32, #tpu.memory_space<vmem>>, %arg5: memref<6x1x16xf32, #tpu.memory_space<vmem>>, %arg6: memref<8x128xf32, #tpu.memory_space<vmem>>) attributes {dimension_semantics = [], scalar_prefetch = 0 : i64, scratch_operands = 0 : i64, tpu.core_type = #tpu.core_type<tc>} {
    %c0 = arith.constant 0 : index
    %c0_0 = arith.constant 0 : index
    %0 = vector.load %arg0[%c0, %c0_0] : memref<8x8xf32, #tpu.memory_space<vmem>>, vector<8x8xf32>
    %c0_1 = arith.constant 0 : index
    %c0_2 = arith.constant 0 : index
    %1 = vector.load %arg1[%c0_1, %c0_2] : memref<8x128xf32, #tpu.memory_space<vmem>>, vector<8x128xf32>
    %cst = arith.constant dense<0.000000e+00> : vector<8x128xf32>
    %2 = tpu.matmul %0, %1, %cst {dimension_numbers = #tpu.dot_dimension_numbers<[1], [0], [0], [1], [0, 0, 1, 1], [], []>} : vector<8x8xf32>, vector<8x128xf32>, vector<8x128xf32> -> vector<8x128xf32>
    %3 = vector.extract_strided_slice %2 {offsets = [0, 0], sizes = [8, 16], strides = [1, 1]} : vector<8x128xf32> to vector<8x16xf32>
    %cst_3 = arith.constant dense<0.000000e+00> : vector<16xf32>
    %4 = vector.multi_reduction <add>, %3, %cst_3 [0] : vector<8x16xf32> to vector<16xf32>
    %5 = vector.shape_cast %4 : vector<16xf32> to vector<1x16xf32>
    %cst_4 = arith.constant 8.000000e+00 : f32
    %6 = vector.broadcast %cst_4 : f32 to vector<1x16xf32>
    %7 = arith.divf %5, %6 : vector<1x16xf32>
    %8 = arith.mulf %3, %3 : vector<8x16xf32>
    %cst_5 = arith.constant dense<0.000000e+00> : vector<16xf32>
    %9 = vector.multi_reduction <add>, %8, %cst_5 [0] : vector<8x16xf32> to vector<16xf32>
    %10 = vector.shape_cast %9 : vector<16xf32> to vector<1x16xf32>
    %cst_6 = arith.constant 8.000000e+00 : f32
    %11 = vector.broadcast %cst_6 : f32 to vector<1x16xf32>
    %12 = arith.divf %10, %11 : vector<1x16xf32>
    %13 = arith.mulf %7, %7 : vector<1x16xf32>
    %14 = arith.subf %12, %13 : vector<1x16xf32>
    %c0_7 = arith.constant 0 : index
    %c0_8 = arith.constant 0 : index
    %c0_9 = arith.constant 0 : index
    %15 = vector.load %arg4[%c0_7, %c0_8, %c0_9] : memref<6x1x16xf32, #tpu.memory_space<vmem>>, vector<1x1x16xf32>
    %16 = vector.shape_cast %15 : vector<1x1x16xf32> to vector<1x16xf32>
    %cst_10 = arith.constant 9.99999974E-6 : f32
    %17 = vector.broadcast %cst_10 : f32 to vector<1x16xf32>
    %18 = arith.addf %14, %17 : vector<1x16xf32>
    %19 = math.rsqrt %18 : vector<1x16xf32>
    %20 = arith.mulf %16, %19 : vector<1x16xf32>
    %c0_11 = arith.constant 0 : index
    %c0_12 = arith.constant 0 : index
    %c0_13 = arith.constant 0 : index
    %21 = vector.load %arg5[%c0_11, %c0_12, %c0_13] : memref<6x1x16xf32, #tpu.memory_space<vmem>>, vector<1x1x16xf32>
    %22 = vector.shape_cast %21 : vector<1x1x16xf32> to vector<1x16xf32>
    %23 = arith.mulf %7, %20 : vector<1x16xf32>
    %24 = arith.subf %22, %23 : vector<1x16xf32>
    %25 = vector.broadcast %20 : vector<1x16xf32> to vector<8x16xf32>
    %26 = arith.mulf %3, %25 : vector<8x16xf32>
    %27 = vector.broadcast %24 : vector<1x16xf32> to vector<8x16xf32>
    %28 = arith.addf %26, %27 : vector<8x16xf32>
    %c0_14 = arith.constant 0 : index
    %c0_15 = arith.constant 0 : index
    %c0_16 = arith.constant 0 : index
    %29 = vector.load %arg2[%c0_14, %c0_15, %c0_16] : memref<6x16x128xf32, #tpu.memory_space<vmem>>, vector<1x16x128xf32>
    %30 = vector.shape_cast %29 : vector<1x16x128xf32> to vector<16x128xf32>
    %cst_17 = arith.constant dense<0.000000e+00> : vector<8x128xf32>
    %31 = tpu.matmul %28, %30, %cst_17 {dimension_numbers = #tpu.dot_dimension_numbers<[1], [0], [0], [1], [0, 0, 1, 1], [], []>} : vector<8x16xf32>, vector<16x128xf32>, vector<8x128xf32> -> vector<8x128xf32>
    %32 = vector.extract_strided_slice %31 {offsets = [0, 0], sizes = [8, 16], strides = [1, 1]} : vector<8x128xf32> to vector<8x16xf32>
    %cst_18 = arith.constant dense<0.000000e+00> : vector<16xf32>
    %33 = vector.multi_reduction <add>, %32, %cst_18 [0] : vector<8x16xf32> to vector<16xf32>
    %34 = vector.shape_cast %33 : vector<16xf32> to vector<1x16xf32>
    %cst_19 = arith.constant 8.000000e+00 : f32
    %35 = vector.broadcast %cst_19 : f32 to vector<1x16xf32>
    %36 = arith.divf %34, %35 : vector<1x16xf32>
    %37 = arith.mulf %32, %32 : vector<8x16xf32>
    %cst_20 = arith.constant dense<0.000000e+00> : vector<16xf32>
    %38 = vector.multi_reduction <add>, %37, %cst_20 [0] : vector<8x16xf32> to vector<16xf32>
    %39 = vector.shape_cast %38 : vector<16xf32> to vector<1x16xf32>
    %cst_21 = arith.constant 8.000000e+00 : f32
    %40 = vector.broadcast %cst_21 : f32 to vector<1x16xf32>
    %41 = arith.divf %39, %40 : vector<1x16xf32>
    %42 = arith.mulf %36, %36 : vector<1x16xf32>
    %43 = arith.subf %41, %42 : vector<1x16xf32>
    %c1 = arith.constant 1 : index
    %c0_22 = arith.constant 0 : index
    %c0_23 = arith.constant 0 : index
    %44 = vector.load %arg4[%c1, %c0_22, %c0_23] : memref<6x1x16xf32, #tpu.memory_space<vmem>>, vector<1x1x16xf32>
    %45 = vector.shape_cast %44 : vector<1x1x16xf32> to vector<1x16xf32>
    %cst_24 = arith.constant 9.99999974E-6 : f32
    %46 = vector.broadcast %cst_24 : f32 to vector<1x16xf32>
    %47 = arith.addf %43, %46 : vector<1x16xf32>
    %48 = math.rsqrt %47 : vector<1x16xf32>
    %49 = arith.mulf %45, %48 : vector<1x16xf32>
    %c1_25 = arith.constant 1 : index
    %c0_26 = arith.constant 0 : index
    %c0_27 = arith.constant 0 : index
    %50 = vector.load %arg5[%c1_25, %c0_26, %c0_27] : memref<6x1x16xf32, #tpu.memory_space<vmem>>, vector<1x1x16xf32>
    %51 = vector.shape_cast %50 : vector<1x1x16xf32> to vector<1x16xf32>
    %52 = arith.mulf %36, %49 : vector<1x16xf32>
    %53 = arith.subf %51, %52 : vector<1x16xf32>
    %54 = vector.broadcast %49 : vector<1x16xf32> to vector<8x16xf32>
    %55 = arith.mulf %32, %54 : vector<8x16xf32>
    %56 = vector.broadcast %53 : vector<1x16xf32> to vector<8x16xf32>
    %57 = arith.addf %55, %56 : vector<8x16xf32>
    %c1_28 = arith.constant 1 : index
    %c0_29 = arith.constant 0 : index
    %c0_30 = arith.constant 0 : index
    %58 = vector.load %arg2[%c1_28, %c0_29, %c0_30] : memref<6x16x128xf32, #tpu.memory_space<vmem>>, vector<1x16x128xf32>
    %59 = vector.shape_cast %58 : vector<1x16x128xf32> to vector<16x128xf32>
    %cst_31 = arith.constant dense<0.000000e+00> : vector<8x128xf32>
    %60 = tpu.matmul %57, %59, %cst_31 {dimension_numbers = #tpu.dot_dimension_numbers<[1], [0], [0], [1], [0, 0, 1, 1], [], []>} : vector<8x16xf32>, vector<16x128xf32>, vector<8x128xf32> -> vector<8x128xf32>
    %61 = vector.extract_strided_slice %60 {offsets = [0, 0], sizes = [8, 16], strides = [1, 1]} : vector<8x128xf32> to vector<8x16xf32>
    %cst_32 = arith.constant dense<0.000000e+00> : vector<16xf32>
    %62 = vector.multi_reduction <add>, %61, %cst_32 [0] : vector<8x16xf32> to vector<16xf32>
    %63 = vector.shape_cast %62 : vector<16xf32> to vector<1x16xf32>
    %cst_33 = arith.constant 8.000000e+00 : f32
    %64 = vector.broadcast %cst_33 : f32 to vector<1x16xf32>
    %65 = arith.divf %63, %64 : vector<1x16xf32>
    %66 = arith.mulf %61, %61 : vector<8x16xf32>
    %cst_34 = arith.constant dense<0.000000e+00> : vector<16xf32>
    %67 = vector.multi_reduction <add>, %66, %cst_34 [0] : vector<8x16xf32> to vector<16xf32>
    %68 = vector.shape_cast %67 : vector<16xf32> to vector<1x16xf32>
    %cst_35 = arith.constant 8.000000e+00 : f32
    %69 = vector.broadcast %cst_35 : f32 to vector<1x16xf32>
    %70 = arith.divf %68, %69 : vector<1x16xf32>
    %71 = arith.mulf %65, %65 : vector<1x16xf32>
    %72 = arith.subf %70, %71 : vector<1x16xf32>
    %c2 = arith.constant 2 : index
    %c0_36 = arith.constant 0 : index
    %c0_37 = arith.constant 0 : index
    %73 = vector.load %arg4[%c2, %c0_36, %c0_37] : memref<6x1x16xf32, #tpu.memory_space<vmem>>, vector<1x1x16xf32>
    %74 = vector.shape_cast %73 : vector<1x1x16xf32> to vector<1x16xf32>
    %cst_38 = arith.constant 9.99999974E-6 : f32
    %75 = vector.broadcast %cst_38 : f32 to vector<1x16xf32>
    %76 = arith.addf %72, %75 : vector<1x16xf32>
    %77 = math.rsqrt %76 : vector<1x16xf32>
    %78 = arith.mulf %74, %77 : vector<1x16xf32>
    %c2_39 = arith.constant 2 : index
    %c0_40 = arith.constant 0 : index
    %c0_41 = arith.constant 0 : index
    %79 = vector.load %arg5[%c2_39, %c0_40, %c0_41] : memref<6x1x16xf32, #tpu.memory_space<vmem>>, vector<1x1x16xf32>
    %80 = vector.shape_cast %79 : vector<1x1x16xf32> to vector<1x16xf32>
    %81 = arith.mulf %65, %78 : vector<1x16xf32>
    %82 = arith.subf %80, %81 : vector<1x16xf32>
    %83 = vector.broadcast %78 : vector<1x16xf32> to vector<8x16xf32>
    %84 = arith.mulf %61, %83 : vector<8x16xf32>
    %85 = vector.broadcast %82 : vector<1x16xf32> to vector<8x16xf32>
    %86 = arith.addf %84, %85 : vector<8x16xf32>
    %c2_42 = arith.constant 2 : index
    %c0_43 = arith.constant 0 : index
    %c0_44 = arith.constant 0 : index
    %87 = vector.load %arg2[%c2_42, %c0_43, %c0_44] : memref<6x16x128xf32, #tpu.memory_space<vmem>>, vector<1x16x128xf32>
    %88 = vector.shape_cast %87 : vector<1x16x128xf32> to vector<16x128xf32>
    %cst_45 = arith.constant dense<0.000000e+00> : vector<8x128xf32>
    %89 = tpu.matmul %86, %88, %cst_45 {dimension_numbers = #tpu.dot_dimension_numbers<[1], [0], [0], [1], [0, 0, 1, 1], [], []>} : vector<8x16xf32>, vector<16x128xf32>, vector<8x128xf32> -> vector<8x128xf32>
    %90 = vector.extract_strided_slice %89 {offsets = [0, 0], sizes = [8, 16], strides = [1, 1]} : vector<8x128xf32> to vector<8x16xf32>
    %cst_46 = arith.constant dense<0.000000e+00> : vector<16xf32>
    %91 = vector.multi_reduction <add>, %90, %cst_46 [0] : vector<8x16xf32> to vector<16xf32>
    %92 = vector.shape_cast %91 : vector<16xf32> to vector<1x16xf32>
    %cst_47 = arith.constant 8.000000e+00 : f32
    %93 = vector.broadcast %cst_47 : f32 to vector<1x16xf32>
    %94 = arith.divf %92, %93 : vector<1x16xf32>
    %95 = arith.mulf %90, %90 : vector<8x16xf32>
    %cst_48 = arith.constant dense<0.000000e+00> : vector<16xf32>
    %96 = vector.multi_reduction <add>, %95, %cst_48 [0] : vector<8x16xf32> to vector<16xf32>
    %97 = vector.shape_cast %96 : vector<16xf32> to vector<1x16xf32>
    %cst_49 = arith.constant 8.000000e+00 : f32
    %98 = vector.broadcast %cst_49 : f32 to vector<1x16xf32>
    %99 = arith.divf %97, %98 : vector<1x16xf32>
    %100 = arith.mulf %94, %94 : vector<1x16xf32>
    %101 = arith.subf %99, %100 : vector<1x16xf32>
    %c3 = arith.constant 3 : index
    %c0_50 = arith.constant 0 : index
    %c0_51 = arith.constant 0 : index
    %102 = vector.load %arg4[%c3, %c0_50, %c0_51] : memref<6x1x16xf32, #tpu.memory_space<vmem>>, vector<1x1x16xf32>
    %103 = vector.shape_cast %102 : vector<1x1x16xf32> to vector<1x16xf32>
    %cst_52 = arith.constant 9.99999974E-6 : f32
    %104 = vector.broadcast %cst_52 : f32 to vector<1x16xf32>
    %105 = arith.addf %101, %104 : vector<1x16xf32>
    %106 = math.rsqrt %105 : vector<1x16xf32>
    %107 = arith.mulf %103, %106 : vector<1x16xf32>
    %c3_53 = arith.constant 3 : index
    %c0_54 = arith.constant 0 : index
    %c0_55 = arith.constant 0 : index
    %108 = vector.load %arg5[%c3_53, %c0_54, %c0_55] : memref<6x1x16xf32, #tpu.memory_space<vmem>>, vector<1x1x16xf32>
    %109 = vector.shape_cast %108 : vector<1x1x16xf32> to vector<1x16xf32>
    %110 = arith.mulf %94, %107 : vector<1x16xf32>
    %111 = arith.subf %109, %110 : vector<1x16xf32>
    %112 = vector.broadcast %107 : vector<1x16xf32> to vector<8x16xf32>
    %113 = arith.mulf %90, %112 : vector<8x16xf32>
    %114 = vector.broadcast %111 : vector<1x16xf32> to vector<8x16xf32>
    %115 = arith.addf %113, %114 : vector<8x16xf32>
    %c3_56 = arith.constant 3 : index
    %c0_57 = arith.constant 0 : index
    %c0_58 = arith.constant 0 : index
    %116 = vector.load %arg2[%c3_56, %c0_57, %c0_58] : memref<6x16x128xf32, #tpu.memory_space<vmem>>, vector<1x16x128xf32>
    %117 = vector.shape_cast %116 : vector<1x16x128xf32> to vector<16x128xf32>
    %cst_59 = arith.constant dense<0.000000e+00> : vector<8x128xf32>
    %118 = tpu.matmul %115, %117, %cst_59 {dimension_numbers = #tpu.dot_dimension_numbers<[1], [0], [0], [1], [0, 0, 1, 1], [], []>} : vector<8x16xf32>, vector<16x128xf32>, vector<8x128xf32> -> vector<8x128xf32>
    %119 = vector.extract_strided_slice %118 {offsets = [0, 0], sizes = [8, 16], strides = [1, 1]} : vector<8x128xf32> to vector<8x16xf32>
    %cst_60 = arith.constant dense<0.000000e+00> : vector<16xf32>
    %120 = vector.multi_reduction <add>, %119, %cst_60 [0] : vector<8x16xf32> to vector<16xf32>
    %121 = vector.shape_cast %120 : vector<16xf32> to vector<1x16xf32>
    %cst_61 = arith.constant 8.000000e+00 : f32
    %122 = vector.broadcast %cst_61 : f32 to vector<1x16xf32>
    %123 = arith.divf %121, %122 : vector<1x16xf32>
    %124 = arith.mulf %119, %119 : vector<8x16xf32>
    %cst_62 = arith.constant dense<0.000000e+00> : vector<16xf32>
    %125 = vector.multi_reduction <add>, %124, %cst_62 [0] : vector<8x16xf32> to vector<16xf32>
    %126 = vector.shape_cast %125 : vector<16xf32> to vector<1x16xf32>
    %cst_63 = arith.constant 8.000000e+00 : f32
    %127 = vector.broadcast %cst_63 : f32 to vector<1x16xf32>
    %128 = arith.divf %126, %127 : vector<1x16xf32>
    %129 = arith.mulf %123, %123 : vector<1x16xf32>
    %130 = arith.subf %128, %129 : vector<1x16xf32>
    %c4 = arith.constant 4 : index
    %c0_64 = arith.constant 0 : index
    %c0_65 = arith.constant 0 : index
    %131 = vector.load %arg4[%c4, %c0_64, %c0_65] : memref<6x1x16xf32, #tpu.memory_space<vmem>>, vector<1x1x16xf32>
    %132 = vector.shape_cast %131 : vector<1x1x16xf32> to vector<1x16xf32>
    %cst_66 = arith.constant 9.99999974E-6 : f32
    %133 = vector.broadcast %cst_66 : f32 to vector<1x16xf32>
    %134 = arith.addf %130, %133 : vector<1x16xf32>
    %135 = math.rsqrt %134 : vector<1x16xf32>
    %136 = arith.mulf %132, %135 : vector<1x16xf32>
    %c4_67 = arith.constant 4 : index
    %c0_68 = arith.constant 0 : index
    %c0_69 = arith.constant 0 : index
    %137 = vector.load %arg5[%c4_67, %c0_68, %c0_69] : memref<6x1x16xf32, #tpu.memory_space<vmem>>, vector<1x1x16xf32>
    %138 = vector.shape_cast %137 : vector<1x1x16xf32> to vector<1x16xf32>
    %139 = arith.mulf %123, %136 : vector<1x16xf32>
    %140 = arith.subf %138, %139 : vector<1x16xf32>
    %141 = vector.broadcast %136 : vector<1x16xf32> to vector<8x16xf32>
    %142 = arith.mulf %119, %141 : vector<8x16xf32>
    %143 = vector.broadcast %140 : vector<1x16xf32> to vector<8x16xf32>
    %144 = arith.addf %142, %143 : vector<8x16xf32>
    %c4_70 = arith.constant 4 : index
    %c0_71 = arith.constant 0 : index
    %c0_72 = arith.constant 0 : index
    %145 = vector.load %arg2[%c4_70, %c0_71, %c0_72] : memref<6x16x128xf32, #tpu.memory_space<vmem>>, vector<1x16x128xf32>
    %146 = vector.shape_cast %145 : vector<1x16x128xf32> to vector<16x128xf32>
    %cst_73 = arith.constant dense<0.000000e+00> : vector<8x128xf32>
    %147 = tpu.matmul %144, %146, %cst_73 {dimension_numbers = #tpu.dot_dimension_numbers<[1], [0], [0], [1], [0, 0, 1, 1], [], []>} : vector<8x16xf32>, vector<16x128xf32>, vector<8x128xf32> -> vector<8x128xf32>
    %148 = vector.extract_strided_slice %147 {offsets = [0, 0], sizes = [8, 16], strides = [1, 1]} : vector<8x128xf32> to vector<8x16xf32>
    %cst_74 = arith.constant dense<0.000000e+00> : vector<16xf32>
    %149 = vector.multi_reduction <add>, %148, %cst_74 [0] : vector<8x16xf32> to vector<16xf32>
    %150 = vector.shape_cast %149 : vector<16xf32> to vector<1x16xf32>
    %cst_75 = arith.constant 8.000000e+00 : f32
    %151 = vector.broadcast %cst_75 : f32 to vector<1x16xf32>
    %152 = arith.divf %150, %151 : vector<1x16xf32>
    %153 = arith.mulf %148, %148 : vector<8x16xf32>
    %cst_76 = arith.constant dense<0.000000e+00> : vector<16xf32>
    %154 = vector.multi_reduction <add>, %153, %cst_76 [0] : vector<8x16xf32> to vector<16xf32>
    %155 = vector.shape_cast %154 : vector<16xf32> to vector<1x16xf32>
    %cst_77 = arith.constant 8.000000e+00 : f32
    %156 = vector.broadcast %cst_77 : f32 to vector<1x16xf32>
    %157 = arith.divf %155, %156 : vector<1x16xf32>
    %158 = arith.mulf %152, %152 : vector<1x16xf32>
    %159 = arith.subf %157, %158 : vector<1x16xf32>
    %c5 = arith.constant 5 : index
    %c0_78 = arith.constant 0 : index
    %c0_79 = arith.constant 0 : index
    %160 = vector.load %arg4[%c5, %c0_78, %c0_79] : memref<6x1x16xf32, #tpu.memory_space<vmem>>, vector<1x1x16xf32>
    %161 = vector.shape_cast %160 : vector<1x1x16xf32> to vector<1x16xf32>
    %cst_80 = arith.constant 9.99999974E-6 : f32
    %162 = vector.broadcast %cst_80 : f32 to vector<1x16xf32>
    %163 = arith.addf %159, %162 : vector<1x16xf32>
    %164 = math.rsqrt %163 : vector<1x16xf32>
    %165 = arith.mulf %161, %164 : vector<1x16xf32>
    %c5_81 = arith.constant 5 : index
    %c0_82 = arith.constant 0 : index
    %c0_83 = arith.constant 0 : index
    %166 = vector.load %arg5[%c5_81, %c0_82, %c0_83] : memref<6x1x16xf32, #tpu.memory_space<vmem>>, vector<1x1x16xf32>
    %167 = vector.shape_cast %166 : vector<1x1x16xf32> to vector<1x16xf32>
    %168 = arith.mulf %152, %165 : vector<1x16xf32>
    %169 = arith.subf %167, %168 : vector<1x16xf32>
    %170 = vector.broadcast %165 : vector<1x16xf32> to vector<8x16xf32>
    %171 = arith.mulf %148, %170 : vector<8x16xf32>
    %172 = vector.broadcast %169 : vector<1x16xf32> to vector<8x16xf32>
    %173 = arith.addf %171, %172 : vector<8x16xf32>
    %c5_84 = arith.constant 5 : index
    %c0_85 = arith.constant 0 : index
    %c0_86 = arith.constant 0 : index
    %174 = vector.load %arg2[%c5_84, %c0_85, %c0_86] : memref<6x16x128xf32, #tpu.memory_space<vmem>>, vector<1x16x128xf32>
    %175 = vector.shape_cast %174 : vector<1x16x128xf32> to vector<16x128xf32>
    %cst_87 = arith.constant dense<0.000000e+00> : vector<8x128xf32>
    %176 = tpu.matmul %173, %175, %cst_87 {dimension_numbers = #tpu.dot_dimension_numbers<[1], [0], [0], [1], [0, 0, 1, 1], [], []>} : vector<8x16xf32>, vector<16x128xf32>, vector<8x128xf32> -> vector<8x128xf32>
    %c0_88 = arith.constant 0 : index
    %c0_89 = arith.constant 0 : index
    %177 = vector.load %arg3[%c0_88, %c0_89] : memref<1x128xf32, #tpu.memory_space<vmem>>, vector<1x128xf32>
    %178 = vector.broadcast %177 : vector<1x128xf32> to vector<8x128xf32>
    %179 = arith.addf %176, %178 : vector<8x128xf32>
    %180 = arith.negf %179 : vector<8x128xf32>
    %181 = math.exp %180 : vector<8x128xf32>
    %cst_90 = arith.constant 1.000000e+00 : f32
    %182 = vector.broadcast %cst_90 : f32 to vector<8x128xf32>
    %183 = arith.addf %182, %181 : vector<8x128xf32>
    %184 = arith.divf %182, %183 : vector<8x128xf32>
    %c0_91 = arith.constant 0 : index
    %c0_92 = arith.constant 0 : index
    %185 = vector.load %arg6[%c0_91, %c0_92] : memref<8x128xf32, #tpu.memory_space<vmem>>, vector<8x128xf32>
    tpu.vector_store %arg6[%c0_91, %c0_92], %184 {strides = array<i32>} : memref<8x128xf32, #tpu.memory_space<vmem>>, vector<8x128xf32>,
    return
  }
}

</mosaic_0001>

<bundles_post_ra>
// kernel: mlp_forward.1
= control target key start
LH: loop header
LB: loop body
LE: loop exit
PB: predicated region body
PF: predicated region fallthrough
CT: control target
= control target key end

     0   :  { %11 = vsyncpa [#allocation3], 0  ;;  %s1189_s0 = inlined_call_operand.vmem [shape: f32[8,8], index: 0, kind: input, shape index: {}]   ;;  %s1190_s1 = inlined_call_operand.vmem [shape: f32[8,128], index: 1, kind: input, shape index: {}]   ;;  %s1191_s2 = inlined_call_operand.hbm [shape: f32[6,16,128], index: 2, kind: input, shape index: {}]   ;;  %s1192_s3 = inlined_call_operand.vmem [shape: f32[1,128], index: 3, kind: input, shape index: {}]   ;;  %s1193_s4 = inlined_call_operand.vmem [shape: f32[6,1,16], index: 4, kind: input, shape index: {}]   ;;  %s1194_s5 = inlined_call_operand.vmem [shape: f32[6,1,16], index: 5, kind: input, shape index: {}]   ;;  %s1195_s6 = inlined_call_operand.hbm [shape: f32[8,128], index: 6, kind: output, shape index: {}]  }
   0x1   :  { %12 = vsyncpa [#allocation4], 0  ;;  %s1025_s21 = smov [#allocation2]   ;;  %s977_s25 = scalar_lea.hbm %s1191_s2, 1536 }
   0x2   :  { %s22_s22 = sshll.u32 %s1025_s21, 4  ;;  %p978_p0 = scmp.ne.s32.totalorder %s1191_s2, %s977_s25  ;;  %s23_s22 = int_to_ptr.vmem [resolvable:$true] %s22_s22 }
   0x3   :  { %p981_p1 = scmp.lt.u32.totalorder %s977_s25, %s1191_s2 }
   0x5   :  { %p983_p2 = pnand %p981_p1, %p978_p0 }
   0x7   :  { %986 = shalt.err (!%p983_p2)
}
   0x8   :  { %s987_s30 = scalar_lea.vmem %s23_s22, 1536  ;;  %p992_p4 = scmp.lt.s32.totalorder %s23_s22, %s23_s22 }
   0x9   :  { %p988_p3 = scmp.ne.s32.totalorder %s23_s22, %s987_s30  ;;  %p993_p5 = scmp.lt.s32.totalorder %s987_s30, %s987_s30 }
   0xb   :  { %p994_p6 = por %p993_p5, %p992_p4 }
   0xd   :  { %p995_p7 = pnand %p994_p6, %p988_p3 }
   0xf   :  { %998 = shalt.err (!%p995_p7)
}
  0x10   :  { %s1026_s7 = smov 128   ;;  %s1027_s8 = smov 8  }
  0x11   :  { %28 = dma.hbm_to_vmem [thread:$0]  %s1191_s2, 1536, %s23_s22, [#allocation3], %s1026_s7, %s1026_s7, %s1027_s8  }
  0x12   :  { %1021 = dma.done.wait [#allocation3], 1536  }
  0x13   :  { %1022 = vsyncadd [#allocation3], 4294965760  ;;  %v1028_v0 = vmov 0.0   ;;  %vm1029_vm0 = vmmov 0   ;;  %vm40_vm1 = vcmask 64512   ;;  %v39_v1 = vld [vmem:[%s1190_s1] sm:$0xff]  ;;  %v143_v29 = vlaneseq }
  0x14   :  { %889 = vmatprep.subr.mxu0 %v1028_v0  ;;  %891 = vmatprep.mubr.msk.f32.mxu0 %vm1029_vm0, %v1028_v0  ;;  %v38_v2 = vld [vmem:[%s1189_s0] sm:$0xff]  ;;  %v156_v3 = vld [vmem:[#allocation2] sm:$0xff]  ;;  %v157_v4 = vld [vmem:[#allocation2 + $0x8] sm:$0xff]  ;;  %v1030_v6 = vmov 0.0|0.0   ;;  %vm114_vm2 = vcmask 130048  }
  0x15   :  { %898 = vmatprep.mubr.msk.f32.mxu1 %vm1029_vm0, %v1028_v0  ;;  %890 = vmatpush3.msra.mxu0 %v39_v1  ;;  %v937_v5 = vpack.c.bf16 %v157_v4, %v156_v3  ;;  %v144_v30 = vshrl.u32 %v143_v29, 7  ;;  %v135_v31 = vld [vmem:[%s1193_s4] sm:$0x1]  ;;  %v274_v42 = vld [vmem:[#allocation2 + $0x10] sm:$0xff]  ;;  %v852_v4 = vld [vmem:[%s1193_s4 + $0x1] sm:$0x1] }
  0x16   :  { %892 = vmatmul.mubr.msk.f32.vlgmr.msra.gmra.mrb[0].mxu0 %vm40_vm1, %v38_v2  ;;  %936 = vmatprep.subr.bf16.mxu1 %v1030_v6  ;;  %v139_v35 = vld [vmem:[%s1194_s5] sm:$0x1] }
  0x17   :  { %905 = vmatprep.mubr.msk.f32.mxu0 %vm1029_vm0, %v1028_v0  ;;  %939 = vmatprep.subr.bf16.mxu0 %v1030_v6  ;;  %v1100_v32 = vsub.s32 0, %v144_v30  ;;  %v275_v43 = vld [vmem:[#allocation2 + $0x18] sm:$0xff] }
  0x18   :  { %938 = vmatpush3.bf16.msra.mxu1 %v937_v5  ;;  %v940_v44 = vpack.c.bf16 %v275_v43, %v274_v42 }
  0x19   :  { %942 = vmatprep.subr.bf16.mxu1 %v1030_v6 }
  0x1a   :  { %941 = vmatpush3.bf16.msra.mxu0 %v940_v44  ;;  %v856_v44 = vld [vmem:[%s1194_s5 + $0x2] sm:$0x1] }
  0x1b   :  { %945 = vmatprep.subr.bf16.mxu0 %v1030_v6 }
  0xe9   :  { %v110_v7 = vpop.f32.mrb[0].mxu0 }
  0xea   :  { %v115_v8 = vsel %vm114_vm2, %v110_v7, 0.0  ;;  %v124_v9 = vmul.f32 %v110_v7, %v110_v7  ;;  %v893_v10 = vpop.f32.mrb[1].mxu0 }
  0xeb   :  { %v116_v11 = vrot.slane %v115_v8, 4 }
  0xec   :  { %v125_v12 = vsel %vm114_vm2, %v124_v9, 0.0 }
  0xed   :  { %v117_v13 = vadd.f32 %v116_v11, %v115_v8  ;;  %v126_v14 = vrot.slane %v125_v12, 4  ;;  %v853_v8 = vld [vmem:[%s1194_s5 + $0x1] sm:$0x1] }
  0xef   :  { %v118_v15 = vrot.slane %v117_v13, 2  ;;  %v127_v16 = vadd.f32 %v126_v14, %v125_v12 }
  0xf1   :  { %v119_v17 = vadd.f32 %v118_v15, %v117_v13  ;;  %v128_v18 = vrot.slane %v127_v16, 2  ;;  %v392_v15 = vld [vmem:[#allocation2 + $0x20] sm:$0xff] }
  0xf3   :  { %v120_v19 = vrot.slane %v119_v17, 1  ;;  %v129_v20 = vadd.f32 %v128_v18, %v127_v16  ;;  %v393_v16 = vld [vmem:[#allocation2 + $0x28] sm:$0xff] }
  0xf5   :  { %v121_v21 = vadd.f32 %v120_v19, %v119_v17  ;;  %v130_v22 = vrot.slane %v129_v20, 1  ;;  %v943_v17 = vpack.c.bf16 %v393_v16, %v392_v15  ;;  %v859_v16 = vld [vmem:[%s1194_s5 + $0x3] sm:$0x1] }
  0xf7   :  { %v123_v23 = vmul.f32 0.125, %v121_v21  ;;  %v131_v24 = vadd.f32 %v130_v22, %v129_v20 }
  0xf9   :  { %v132_v25 = vmul.f32 0.125, %v131_v24  ;;  %v133_v26 = vmul.f32 %v123_v23, %v123_v23 }
  0xfb   :  { %v134_v27 = vsub.f32 %v132_v25, %v133_v26 }
  0xfd   :  { %v136_v28 = vadd.f32 1e-05, %v134_v27 }
  0xff   :  { %961 = vrsqrt.f32 %v136_v28 }
 0x109   :  { %v962_v33 = vpop.eup %961 }
 0x10a   :  { %v138_v34 = vmul.f32 %v962_v33, %v135_v31 }
 0x10c   :  { %v140_v36 = vmul.f32 %v138_v34, %v123_v23  ;;  %v146_v37 = vrot.slane %v138_v34, %v1100_v32 }
 0x10e   :  { %v141_v38 = vsub.f32 %v139_v35, %v140_v36  ;;  %v148_v39 = vmul.f32 %v146_v37, %v110_v7 }
 0x110   :  { %v153_v40 = vrot.slane %v141_v38, %v1100_v32 }
 0x112   :  { %v155_v41 = vadd.f32 %v153_v40, %v148_v39 }
 0x114   :  { %899 = vmatmul.mubr.msk.f32.vlgmr.msra.gmra.mrb[0].mxu1 %vm114_vm2, %v155_v41  ;;  %v855_v41 = vld [vmem:[%s1193_s4 + $0x2] sm:$0x1] }
 0x115   :  { %912 = vmatprep.mubr.msk.f32.mxu1 %vm1029_vm0, %v1028_v0  ;;  %944 = vmatpush3.bf16.msra.mxu1 %v943_v17 }
 0x116   :  { %948 = vmatprep.subr.bf16.mxu1 %v1030_v6 }
 0x1e7   :  { %v227_v45 = vpop.f32.mrb[0].mxu1 }
 0x1e8   :  { %v231_v46 = vsel %vm114_vm2, %v227_v45, 0.0  ;;  %v239_v47 = vmul.f32 %v227_v45, %v227_v45  ;;  %v900_v48 = vpop.f32.mrb[1].mxu1 }
 0x1e9   :  { %v232_v49 = vrot.slane %v231_v46, 4 }
 0x1ea   :  { %v240_v50 = vsel %vm114_vm2, %v239_v47, 0.0 }
 0x1eb   :  { %v233_v51 = vadd.f32 %v232_v49, %v231_v46  ;;  %v241_v52 = vrot.slane %v240_v50, 4 }
 0x1ed   :  { %v234_v53 = vrot.slane %v233_v51, 2  ;;  %v242_v54 = vadd.f32 %v241_v52, %v240_v50  ;;  %v511_v52 = vld [vmem:[#allocation2 + $0x38] sm:$0xff] }
 0x1ef   :  { %v235_v55 = vadd.f32 %v234_v53, %v233_v51  ;;  %v243_v56 = vrot.slane %v242_v54, 2  ;;  %v510_v51 = vld [vmem:[#allocation2 + $0x30] sm:$0xff] }
 0x1f0   :  { %v946_v53 = vpack.c.bf16 %v511_v52, %v510_v51  ;;  %v862_v51 = vld [vmem:[%s1194_s5 + $0x4] sm:$0x1] }
 0x1f1   :  { %v236_v57 = vrot.slane %v235_v55, 1  ;;  %v244_v58 = vadd.f32 %v243_v56, %v242_v54 }
 0x1f3   :  { %v237_v59 = vadd.f32 %v236_v57, %v235_v55  ;;  %v245_v60 = vrot.slane %v244_v58, 1 }
 0x1f5   :  { %v238_v61 = vmul.f32 0.125, %v237_v59  ;;  %v246_v62 = vadd.f32 %v245_v60, %v244_v58 }
 0x1f7   :  { %v247_v63 = vmul.f32 0.125, %v246_v62  ;;  %v248_v1 = vmul.f32 %v238_v61, %v238_v61 }
 0x1f9   :  { %v249_v2 = vsub.f32 %v247_v63, %v248_v1 }
 0x1fb   :  { %v252_v3 = vadd.f32 1e-05, %v249_v2 }
 0x1fd   :  { %963 = vrsqrt.f32 %v252_v3 }
 0x207   :  { %v964_v5 = vpop.eup %963 }
 0x208   :  { %v254_v7 = vmul.f32 %v964_v5, %v852_v4 }
 0x20a   :  { %v257_v9 = vmul.f32 %v254_v7, %v238_v61  ;;  %v263_v10 = vrot.slane %v254_v7, %v1100_v32 }
 0x20c   :  { %v258_v11 = vsub.f32 %v853_v8, %v257_v9  ;;  %v265_v12 = vmul.f32 %v263_v10, %v227_v45 }
 0x20e   :  { %v270_v13 = vrot.slane %v258_v11, %v1100_v32 }
 0x210   :  { %v272_v14 = vadd.f32 %v270_v13, %v265_v12  ;;  %v858_v13 = vld [vmem:[%s1193_s4 + $0x3] sm:$0x1] }
 0x212   :  { %906 = vmatmul.mubr.msk.f32.vlgmr.msra.gmra.mrb[2].mxu0 %vm114_vm2, %v272_v14 }
 0x213   :  { %919 = vmatprep.mubr.msk.f32.mxu0 %vm1029_vm0, %v1028_v0  ;;  %947 = vmatpush3.bf16.msra.mxu0 %v946_v53 }
 0x214   :  { %951 = vmatprep.subr.bf16.mxu0 %v1030_v6 }
 0x2e5   :  { %v345_v18 = vpop.f32.mrb[2].mxu0 }
 0x2e6   :  { %v349_v19 = vsel %vm114_vm2, %v345_v18, 0.0  ;;  %v357_v20 = vmul.f32 %v345_v18, %v345_v18  ;;  %v907_v21 = vpop.f32.mrb[3].mxu0 }
 0x2e7   :  { %v350_v22 = vrot.slane %v349_v19, 4 }
 0x2e8   :  { %v358_v23 = vsel %vm114_vm2, %v357_v20, 0.0 }
 0x2e9   :  { %v351_v24 = vadd.f32 %v350_v22, %v349_v19  ;;  %v359_v25 = vrot.slane %v358_v23, 4 }
 0x2eb   :  { %v352_v26 = vrot.slane %v351_v24, 2  ;;  %v360_v27 = vadd.f32 %v359_v25, %v358_v23  ;;  %v628_v23 = vld [vmem:[#allocation2 + $0x40] sm:$0xff] }
 0x2ed   :  { %v353_v28 = vadd.f32 %v352_v26, %v351_v24  ;;  %v361_v29 = vrot.slane %v360_v27, 2  ;;  %v629_v24 = vld [vmem:[#allocation2 + $0x48] sm:$0xff] }
 0x2ee   :  { %v949_v25 = vpack.c.bf16 %v629_v24, %v628_v23  ;;  %v865_v23 = vld [vmem:[%s1194_s5 + $0x5] sm:$0x1] }
 0x2ef   :  { %v354_v30 = vrot.slane %v353_v28, 1  ;;  %v362_v31 = vadd.f32 %v361_v29, %v360_v27 }
 0x2f1   :  { %v355_v33 = vadd.f32 %v354_v30, %v353_v28  ;;  %v363_v34 = vrot.slane %v362_v31, 1 }
 0x2f3   :  { %v356_v35 = vmul.f32 0.125, %v355_v33  ;;  %v364_v36 = vadd.f32 %v363_v34, %v362_v31 }
 0x2f5   :  { %v365_v37 = vmul.f32 0.125, %v364_v36  ;;  %v366_v38 = vmul.f32 %v356_v35, %v356_v35 }
 0x2f7   :  { %v367_v39 = vsub.f32 %v365_v37, %v366_v38 }
 0x2f9   :  { %v370_v40 = vadd.f32 1e-05, %v367_v39 }
 0x2fb   :  { %965 = vrsqrt.f32 %v370_v40 }
 0x305   :  { %v966_v42 = vpop.eup %965 }
 0x306   :  { %v372_v43 = vmul.f32 %v966_v42, %v855_v41 }
 0x308   :  { %v375_v45 = vmul.f32 %v372_v43, %v356_v35  ;;  %v381_v46 = vrot.slane %v372_v43, %v1100_v32 }
 0x30a   :  { %v376_v47 = vsub.f32 %v856_v44, %v375_v45  ;;  %v383_v48 = vmul.f32 %v381_v46, %v345_v18 }
 0x30c   :  { %v388_v49 = vrot.slane %v376_v47, %v1100_v32 }
 0x30e   :  { %v390_v50 = vadd.f32 %v388_v49, %v383_v48  ;;  %v861_v48 = vld [vmem:[%s1193_s4 + $0x4] sm:$0x1] }
 0x310   :  { %913 = vmatmul.mubr.msk.f32.vlgmr.msra.gmra.mrb[2].mxu1 %vm114_vm2, %v390_v50 }
 0x311   :  { %926 = vmatprep.mubr.msk.f32.mxu1 %vm1029_vm0, %v1028_v0  ;;  %950 = vmatpush3.bf16.msra.mxu1 %v949_v25 }
 0x3e3   :  { %v463_v54 = vpop.f32.mrb[2].mxu1 }
 0x3e4   :  { %v467_v55 = vsel %vm114_vm2, %v463_v54, 0.0  ;;  %v475_v56 = vmul.f32 %v463_v54, %v463_v54  ;;  %v914_v57 = vpop.f32.mrb[3].mxu1 }
 0x3e5   :  { %v468_v58 = vrot.slane %v467_v55, 4 }
 0x3e6   :  { %v476_v59 = vsel %vm114_vm2, %v475_v56, 0.0 }
 0x3e7   :  { %v469_v60 = vadd.f32 %v468_v58, %v467_v55  ;;  %v477_v61 = vrot.slane %v476_v59, 4  ;;  %v746_v58 = vld [vmem:[#allocation2 + $0x50] sm:$0xff] }
 0x3e9   :  { %v470_v62 = vrot.slane %v469_v60, 2  ;;  %v478_v63 = vadd.f32 %v477_v61, %v476_v59  ;;  %v747_v59 = vld [vmem:[#allocation2 + $0x58] sm:$0xff] }
 0x3eb   :  { %v471_v1 = vadd.f32 %v470_v62, %v469_v60  ;;  %v479_v2 = vrot.slane %v478_v63, 2  ;;  %v952_v60 = vpack.c.bf16 %v747_v59, %v746_v58 }
 0x3ed   :  { %v472_v3 = vrot.slane %v471_v1, 1  ;;  %v480_v4 = vadd.f32 %v479_v2, %v478_v63 }
 0x3ef   :  { %v473_v5 = vadd.f32 %v472_v3, %v471_v1  ;;  %v481_v7 = vrot.slane %v480_v4, 1 }
 0x3f1   :  { %v474_v8 = vmul.f32 0.125, %v473_v5  ;;  %v482_v6 = vadd.f32 %v481_v7, %v480_v4 }
 0x3f3   :  { %v483_v9 = vmul.f32 0.125, %v482_v6  ;;  %v484_v10 = vmul.f32 %v474_v8, %v474_v8 }
 0x3f5   :  { %v485_v11 = vsub.f32 %v483_v9, %v484_v10 }
 0x3f7   :  { %v488_v12 = vadd.f32 1e-05, %v485_v11 }
 0x3f9   :  { %967 = vrsqrt.f32 %v488_v12 }
 0x403   :  { %v968_v14 = vpop.eup %967 }
 0x404   :  { %v490_v15 = vmul.f32 %v968_v14, %v858_v13 }
 0x406   :  { %v493_v17 = vmul.f32 %v490_v15, %v474_v8  ;;  %v499_v18 = vrot.slane %v490_v15, %v1100_v32 }
 0x408   :  { %v494_v19 = vsub.f32 %v859_v16, %v493_v17  ;;  %v501_v20 = vmul.f32 %v499_v18, %v463_v54 }
 0x40a   :  { %v506_v21 = vrot.slane %v494_v19, %v1100_v32 }
 0x40c   :  { %v508_v22 = vadd.f32 %v506_v21, %v501_v20  ;;  %v864_v20 = vld [vmem:[%s1193_s4 + $0x5] sm:$0x1]  ;;  %s1031_s4 = smov [#allocation5]  }
 0x40d   :  { %s841_s5 = sshll.u32 %s1031_s4, 4  ;;  %s842_s5 = int_to_ptr.vmem [resolvable:$true] %s841_s5 }
 0x40e   :  { %920 = vmatmul.mubr.msk.f32.vlgmr.msra.gmra.mrb[4].mxu0 %vm114_vm2, %v508_v22  ;;  %s999_s14 = scalar_lea.vmem %s842_s5, 128  ;;  %p1004_p9 = scmp.lt.s32.totalorder %s842_s5, %s842_s5 }
 0x40f   :  { %933 = vmatprep.mubr.msk.f32.mxu0 %vm1029_vm0, %v1028_v0  ;;  %953 = vmatpush3.bf16.msra.mxu0 %v952_v60  ;;  %p1000_p8 = scmp.ne.s32.totalorder %s842_s5, %s999_s14  ;;  %p1005_p10 = scmp.lt.s32.totalorder %s999_s14, %s999_s14 }
 0x411   :  { %p1006_p11 = por %p1005_p10, %p1004_p9 }
 0x413   :  { %p1007_p12 = pnand %p1006_p11, %p1000_p8 }
 0x4e1   :  { %v581_v26 = vpop.f32.mrb[4].mxu0 }
 0x4e2   :  { %v585_v27 = vsel %vm114_vm2, %v581_v26, 0.0  ;;  %v593_v28 = vmul.f32 %v581_v26, %v581_v26  ;;  %v921_v29 = vpop.f32.mrb[5].mxu0 }
 0x4e3   :  { %v586_v30 = vrot.slane %v585_v27, 4 }
 0x4e4   :  { %v594_v31 = vsel %vm114_vm2, %v593_v28, 0.0 }
 0x4e5   :  { %v587_v33 = vadd.f32 %v586_v30, %v585_v27  ;;  %v595_v34 = vrot.slane %v594_v31, 4  ;;  %v866_v30 = vld [vmem:[%s1192_s3] ss:$0 sm:$0xff] }
 0x4e7   :  { %v588_v35 = vrot.slane %v587_v33, 2  ;;  %v596_v36 = vadd.f32 %v595_v34, %v594_v31 }
 0x4e9   :  { %v589_v37 = vadd.f32 %v588_v35, %v587_v33  ;;  %v597_v38 = vrot.slane %v596_v36, 2 }
 0x4eb   :  { %v590_v39 = vrot.slane %v589_v37, 1  ;;  %v598_v0 = vadd.f32 %v597_v38, %v596_v36 }
 0x4ed   :  { %v591_v40 = vadd.f32 %v590_v39, %v589_v37  ;;  %v599_v41 = vrot.slane %v598_v0, 1 }
 0x4ef   :  { %v592_v42 = vmul.f32 0.125, %v591_v40  ;;  %v600_v43 = vadd.f32 %v599_v41, %v598_v0 }
 0x4f1   :  { %v601_v44 = vmul.f32 0.125, %v600_v43  ;;  %v602_v45 = vmul.f32 %v592_v42, %v592_v42 }
 0x4f3   :  { %v603_v46 = vsub.f32 %v601_v44, %v602_v45 }
 0x4f5   :  { %v606_v47 = vadd.f32 1e-05, %v603_v46 }
 0x4f7   :  { %969 = vrsqrt.f32 %v606_v47 }
 0x501   :  { %v970_v49 = vpop.eup %969 }
 0x502   :  { %v608_v50 = vmul.f32 %v970_v49, %v861_v48 }
 0x504   :  { %v611_v52 = vmul.f32 %v608_v50, %v592_v42  ;;  %v617_v53 = vrot.slane %v608_v50, %v1100_v32 }
 0x506   :  { %v612_v54 = vsub.f32 %v862_v51, %v611_v52  ;;  %v619_v55 = vmul.f32 %v617_v53, %v581_v26 }
 0x508   :  { %v624_v56 = vrot.slane %v612_v54, %v1100_v32 }
 0x50a   :  { %v626_v57 = vadd.f32 %v624_v56, %v619_v55 }
 0x50c   :  { %927 = vmatmul.mubr.msk.f32.vlgmr.msra.gmra.mrb[4].mxu1 %vm114_vm2, %v626_v57 }
 0x5df   :  { %v699_v61 = vpop.f32.mrb[4].mxu1 }
 0x5e0   :  { %v703_v62 = vsel %vm114_vm2, %v699_v61, 0.0  ;;  %v711_v63 = vmul.f32 %v699_v61, %v699_v61  ;;  %v928_v1 = vpop.f32.mrb[5].mxu1 }
 0x5e1   :  { %v704_v2 = vrot.slane %v703_v62, 4 }
 0x5e2   :  { %v712_v3 = vsel %vm114_vm2, %v711_v63, 0.0 }
 0x5e3   :  { %v705_v4 = vadd.f32 %v704_v2, %v703_v62  ;;  %v713_v5 = vrot.slane %v712_v3, 4 }
 0x5e5   :  { %v706_v7 = vrot.slane %v705_v4, 2  ;;  %v714_v8 = vadd.f32 %v713_v5, %v712_v3 }
 0x5e7   :  { %v707_v6 = vadd.f32 %v706_v7, %v705_v4  ;;  %v715_v9 = vrot.slane %v714_v8, 2 }
 0x5e9   :  { %v708_v10 = vrot.slane %v707_v6, 1  ;;  %v716_v11 = vadd.f32 %v715_v9, %v714_v8 }
 0x5eb   :  { %v709_v12 = vadd.f32 %v708_v10, %v707_v6  ;;  %v717_v13 = vrot.slane %v716_v11, 1 }
 0x5ed   :  { %v710_v14 = vmul.f32 0.125, %v709_v12  ;;  %v718_v15 = vadd.f32 %v717_v13, %v716_v11 }
 0x5ef   :  { %v719_v16 = vmul.f32 0.125, %v718_v15  ;;  %v720_v17 = vmul.f32 %v710_v14, %v710_v14 }
 0x5f1   :  { %v721_v18 = vsub.f32 %v719_v16, %v720_v17 }
 0x5f3   :  { %v724_v19 = vadd.f32 1e-05, %v721_v18 }
 0x5f5   :  { %971 = vrsqrt.f32 %v724_v19 }
 0x5ff   :  { %v972_v21 = vpop.eup %971 }
 0x600   :  { %v726_v22 = vmul.f32 %v972_v21, %v864_v20 }
 0x602   :  { %v729_v24 = vmul.f32 %v726_v22, %v710_v14  ;;  %v735_v25 = vrot.slane %v726_v22, %v1100_v32 }
 0x604   :  { %v730_v26 = vsub.f32 %v865_v23, %v729_v24  ;;  %v737_v27 = vmul.f32 %v735_v25, %v699_v61 }
 0x606   :  { %v742_v28 = vrot.slane %v730_v26, %v1100_v32 }
 0x608   :  { %v744_v29 = vadd.f32 %v742_v28, %v737_v27 }
 0x60a   :  { %934 = vmatmul.mubr.msk.f32.vlgmr.msra.gmra.mrb[6].mxu0 %vm114_vm2, %v744_v29 }
 0x6dd   :  { %v824_v31 = vpop.f32.mrb[6].mxu0 }
 0x6de   :  { %v825_v33 = vadd.f32 %v866_v30, %v824_v31  ;;  %v935_v34 = vpop.f32.mrb[7].mxu0 }
 0x6e0   :  { %v868_v35 = vmul.f32 -1.442695, %v825_v33 }
 0x6e2   :  { %973 = vpow2.f32 %v868_v35 }
 0x6ec   :  { %v974_v36 = vpop.eup %973 }
 0x6ed   :  { %v831_v37 = vadd.f32 1.0, %v974_v36 }
 0x6ef   :  { %975 = vrcp.f32 %v831_v37 }
 0x6f9   :  { %v976_v38 = vpop.eup %975 }
 0x6fa   :  { %834 = vst [vmem:[#allocation5] sm:$0xff] %v976_v38 }
 0x6fb   :  { %1010 = shalt.err (!%p1007_p12)
}
 0x6fc   :  { %s1011_s1 = scalar_lea.hbm %s1195_s6, 128 }
 0x6fd   :  { %p1012_p13 = scmp.ne.s32.totalorder %s1195_s6, %s1011_s1  ;;  %p1015_p0 = scmp.lt.u32.totalorder %s1011_s1, %s1195_s6 }
 0x6ff   :  { %p1017_p1 = pnand %p1015_p0, %p1012_p13 }
 0x701   :  { %1020 = shalt.err (!%p1017_p1)
}
 0x702   :  { %844 = dma.vmem_to_hbm [thread:$0]  %s842_s5, 128, %s1195_s6, [#allocation4]  }
 0x703   :  { %1023 = dma.done.wait [#allocation4], 128  }
 0x704   :  { %1024 = vsyncadd [#allocation4], 4294967168 }
 0x705   :  { %848 = vsyncpa [#allocation3], 1 }
 0x706   :  { %849 = vsyncpa [#allocation4], 1 }

</bundles_post_ra>
